<compile_context>
chip_gen: v7x
topology: tpu7x:2x2x1
jax: 0.10.0
libtpu: 0.0.40
codegen_flags: <defaults>
</compile_context>

<pallas_src>
import math

import jax
import jax.numpy as jnp
from jax.experimental import pallas as pl
from jax.experimental.pallas import tpu as pltpu


def gmf_kernel(u_ref, mask_ref, w_ref, vt_ref, view_ref, cart_ref, buy_ref):
    # Dropout (training=True semantics): mask holds 0 or 1/(1-p). f32 VPU math.
    u = u_ref[...] * mask_ref[...]                               # [TB, D] f32
    w = w_ref[...]                                               # [3, D]  f32
    tb = u.shape[0]

    # Fused LHS: the three behavior-scaled copies of u stacked along sublanes,
    # built in one vectorized expression (no per-behavior re-broadcast loop).
    uw = (w[:, None, :] * u[None, :, :]).reshape(3 * tb, u.shape[1])  # [3*TB, D]

    # One fused MXU matmul for all three behaviors: [3*TB, D] @ [D, TN].
    # bf16 inputs, f32 accumulation.
    res = jnp.dot(uw.astype(jnp.bfloat16), vt_ref[...],
                  preferred_element_type=jnp.float32)            # [3*TB, TN] f32

    view_ref[...] = res[:tb, :]
    cart_ref[...] = res[tb:2 * tb, :]
    buy_ref[...] = res[2 * tb:, :]


def _pick_tile(dim, pref, align):
    """Largest multiple of `align` <= pref that divides `dim`; else the full dim."""
    if dim % align != 0:
        return dim
    t = min((pref // align) * align, dim)
    while t > 0 and dim % t != 0:
        t -= align
    return t if t > 0 else dim


def _dropout_mask(rng, shape, p):
    """Inverted-dropout mask with values in {0, 1/(1-p)} (training=True)."""
    if p <= 0.0:
        return jnp.ones(shape, jnp.float32)
    if p >= 1.0:                      # guard: avoid 1/(1-p) division by zero
        return jnp.zeros(shape, jnp.float32)
    keep = jax.random.bernoulli(rng, 1.0 - p, shape)
    return keep.astype(jnp.float32) * (1.0 / (1.0 - p))


def gmf_forward(batch_users, whole_items, emb_user, emb_item, weights_3d,
                dropout_ration, dropout_rng):
    """weights_3d: [3, D] = stacked (weight_view, weight_cart, weight_buy).

    whole_items=None means "score the full catalog" (skips the identity gather
    that `embedding_item(arange(num_items))` would be).
    """
    u = jnp.take(emb_user, batch_users, axis=0)                          # [B, D]
    v = emb_item if whole_items is None else jnp.take(emb_item, whole_items, axis=0)
    B, D = u.shape
    N = v.shape[0]

    mask = _dropout_mask(dropout_rng, (B, D), dropout_ration)            # [B, D]
    # Pre-transposed, pre-cast item side: plain [M, D] @ [D, N] in-kernel.
    vt = v.T.astype(jnp.bfloat16)                                        # [D, N]

    TB = _pick_tile(B, 256, 8)
    TN = _pick_tile(N, 512, 128)
    grid = (B // TB, N // TN)

    # VMEM budget: double-buffered blocks + compute temporaries, with headroom,
    # capped under v7x's 64 MiB physical VMEM.
    block_bytes = (2 * TB * D * 4        # u + mask tiles (f32)
                   + D * TN * 2          # vt tile (bf16)
                   + 3 * D * 4           # behavior weights
                   + 3 * TB * TN * 4)    # three output tiles (f32)
    vmem_limit = int(min(max(4 * block_bytes, 16 << 20), 48 << 20))

    out_shape = tuple(jax.ShapeDtypeStruct((B, N), jnp.float32) for _ in range(3))
    out_spec = pl.BlockSpec((TB, TN), lambda bi, nj: (bi, nj))

    return pl.pallas_call(
        gmf_kernel,
        out_shape=out_shape,
        grid=grid,
        in_specs=[
            pl.BlockSpec((TB, D), lambda bi, nj: (bi, 0)),   # u        [B, D]
            pl.BlockSpec((TB, D), lambda bi, nj: (bi, 0)),   # mask     [B, D]
            pl.BlockSpec((3, D), lambda bi, nj: (0, 0)),     # weights  [3, D]
            pl.BlockSpec((D, TN), lambda bi, nj: (0, nj)),   # v^T bf16 [D, N]
        ],
        out_specs=(out_spec, out_spec, out_spec),
        compiler_params=pltpu.CompilerParams(
            dimension_semantics=("parallel", "parallel"),
            vmem_limit_bytes=vmem_limit),
    )(u, mask, weights_3d, vt)


if __name__ == "__main__":
    num_users, num_items, dim_embedding = 32, 16, 32
    batch_size = 8
    dropout_ration = 0.2

    key = jax.random.PRNGKey(0)
    k_user, k_item, k_w, k_batch, k_drop = jax.random.split(key, 5)

    emb_user = 0.01 * jax.random.normal(k_user, (num_users, dim_embedding), jnp.float32)
    emb_item = 0.01 * jax.random.normal(k_item, (num_items, dim_embedding), jnp.float32)
    stdv = 1.0 / math.sqrt(dim_embedding)
    weights_3d = jax.random.uniform(k_w, (3, dim_embedding), jnp.float32, -stdv, stdv)

    batch_users = jax.random.randint(k_batch, (batch_size,), 0, num_users, jnp.int32)

    # whole_items == arange(num_items) in the reference module -> identity
    # gather; pass None so the kernel scores the full catalog directly.
    likelihood_view, likelihood_cart, likelihood_buy = jax.block_until_ready(
        gmf_forward(batch_users, None, emb_user, emb_item, weights_3d,
                    dropout_ration, k_drop))

    assert likelihood_view.shape == (batch_size, num_items)
    assert likelihood_cart.shape == (batch_size, num_items)
    assert likelihood_buy.shape == (batch_size, num_items)

    # Pure-JAX reference using the same dropout mask (sanity check).
    u_ref = jnp.take(emb_user, batch_users, axis=0) * _dropout_mask(
        k_drop, (batch_size, dim_embedding), dropout_ration)
    ref = jnp.einsum("bd,xd,nd->xbn", u_ref, weights_3d, emb_item)
    for got, want in zip((likelihood_view, likelihood_cart, likelihood_buy), ref):
        assert bool(jnp.allclose(got, want, rtol=5e-2, atol=1e-5)), (
            float(jnp.max(jnp.abs(got - want))))

    print("KERNEL_OK")
</pallas_src>

<mosaic_0001>
module attributes {stable_mosaic.version = 11 : i64} {
  func.func @gmf_kernel(%arg0: i32, %arg1: i32, %arg2: memref<8x32xf32, #tpu.memory_space<vmem>>, %arg3: memref<8x32xf32, #tpu.memory_space<vmem>>, %arg4: memref<3x32xf32, #tpu.memory_space<vmem>>, %arg5: memref<32x16xbf16, #tpu.memory_space<vmem>>, %arg6: memref<8x16xf32, #tpu.memory_space<vmem>>, %arg7: memref<8x16xf32, #tpu.memory_space<vmem>>, %arg8: memref<8x16xf32, #tpu.memory_space<vmem>>) attributes {dimension_semantics = [#tpu.dimension_semantics<parallel>, #tpu.dimension_semantics<parallel>], iteration_bounds = array<i64: 1, 1>, scalar_prefetch = 0 : i64, scratch_operands = 0 : i64, tpu.core_type = #tpu.core_type<tc>, window_params = [{transform_indices = @transform_0, window_bounds = array<i64: 8, 32>}, {transform_indices = @transform_1, window_bounds = array<i64: 8, 32>}, {pipeline_mode = #tpu.pipeline_mode<synchronous>, transform_indices = @transform_2, window_bounds = array<i64: 3, 32>}, {transform_indices = @transform_3, window_bounds = array<i64: 32, 16>}, {transform_indices = @transform_4, window_bounds = array<i64: 8, 16>}, {transform_indices = @transform_5, window_bounds = array<i64: 8, 16>}, {transform_indices = @transform_6, window_bounds = array<i64: 8, 16>}]} {
    %c0 = arith.constant 0 : index
    %c0_0 = arith.constant 0 : index
    %0 = vector.load %arg2[%c0, %c0_0] : memref<8x32xf32, #tpu.memory_space<vmem>>, vector<8x32xf32>
    %c0_1 = arith.constant 0 : index
    %c0_2 = arith.constant 0 : index
    %1 = vector.load %arg3[%c0_1, %c0_2] : memref<8x32xf32, #tpu.memory_space<vmem>>, vector<8x32xf32>
    %2 = arith.mulf %0, %1 : vector<8x32xf32>
    %c0_3 = arith.constant 0 : index
    %c0_4 = arith.constant 0 : index
    %3 = vector.load %arg4[%c0_3, %c0_4] : memref<3x32xf32, #tpu.memory_space<vmem>>, vector<3x32xf32>
    %4 = vector.shape_cast %3 : vector<3x32xf32> to vector<3x1x32xf32>
    %5 = vector.shape_cast %2 : vector<8x32xf32> to vector<1x8x32xf32>
    %6 = vector.broadcast %4 : vector<3x1x32xf32> to vector<3x8x32xf32>
    %7 = vector.broadcast %5 : vector<1x8x32xf32> to vector<3x8x32xf32>
    %8 = arith.mulf %6, %7 : vector<3x8x32xf32>
    %9 = vector.shape_cast %8 : vector<3x8x32xf32> to vector<24x32xf32>
    %10 = arith.truncf %9 : vector<24x32xf32> to vector<24x32xbf16>
    %c0_5 = arith.constant 0 : index
    %c0_6 = arith.constant 0 : index
    %11 = vector.load %arg5[%c0_5, %c0_6] : memref<32x16xbf16, #tpu.memory_space<vmem>>, vector<32x16xbf16>
    %cst = arith.constant dense<0.000000e+00> : vector<24x16xf32>
    %12 = tpu.matmul %10, %11, %cst {dimension_numbers = #tpu.dot_dimension_numbers<[1], [0], [0], [1], [0, 0, 1, 1], [], []>} : vector<24x32xbf16>, vector<32x16xbf16>, vector<24x16xf32> -> vector<24x16xf32>
    %13 = vector.extract_strided_slice %12 {offsets = [0, 0], sizes = [8, 16], strides = [1, 1]} : vector<24x16xf32> to vector<8x16xf32>
    %c0_7 = arith.constant 0 : index
    %c0_8 = arith.constant 0 : index
    %14 = vector.load %arg6[%c0_7, %c0_8] : memref<8x16xf32, #tpu.memory_space<vmem>>, vector<8x16xf32>
    tpu.vector_store %arg6[%c0_7, %c0_8], %13 {strides = array<i32>} : memref<8x16xf32, #tpu.memory_space<vmem>>, vector<8x16xf32>,
    %15 = vector.extract_strided_slice %12 {offsets = [8, 0], sizes = [8, 16], strides = [1, 1]} : vector<24x16xf32> to vector<8x16xf32>
    %c0_9 = arith.constant 0 : index
    %c0_10 = arith.constant 0 : index
    %16 = vector.load %arg7[%c0_9, %c0_10] : memref<8x16xf32, #tpu.memory_space<vmem>>, vector<8x16xf32>
    tpu.vector_store %arg7[%c0_9, %c0_10], %15 {strides = array<i32>} : memref<8x16xf32, #tpu.memory_space<vmem>>, vector<8x16xf32>,
    %17 = vector.extract_strided_slice %12 {offsets = [16, 0], sizes = [8, 16], strides = [1, 1]} : vector<24x16xf32> to vector<8x16xf32>
    %c0_11 = arith.constant 0 : index
    %c0_12 = arith.constant 0 : index
    %18 = vector.load %arg8[%c0_11, %c0_12] : memref<8x16xf32, #tpu.memory_space<vmem>>, vector<8x16xf32>
    tpu.vector_store %arg8[%c0_11, %c0_12], %17 {strides = array<i32>} : memref<8x16xf32, #tpu.memory_space<vmem>>, vector<8x16xf32>,
    return
  }
  func.func @transform_0(%arg0: i32, %arg1: i32) -> (i32, i32) {
    %c0_i32 = arith.constant 0 : i32
    %c0_i32_0 = arith.constant 0 : i32
    return %arg0, %c0_i32 : i32, i32
  }
  func.func @transform_1(%arg0: i32, %arg1: i32) -> (i32, i32) {
    %c0_i32 = arith.constant 0 : i32
    %c0_i32_0 = arith.constant 0 : i32
    return %arg0, %c0_i32 : i32, i32
  }
  func.func @transform_2(%arg0: i32, %arg1: i32) -> (i32, i32) {
    %c0_i32 = arith.constant 0 : i32
    %c0_i32_0 = arith.constant 0 : i32
    %c0_i32_1 = arith.constant 0 : i32
    return %c0_i32, %c0_i32_0 : i32, i32
  }
  func.func @transform_3(%arg0: i32, %arg1: i32) -> (i32, i32) {
    %c0_i32 = arith.constant 0 : i32
    %c0_i32_0 = arith.constant 0 : i32
    return %c0_i32, %arg1 : i32, i32
  }
  func.func @transform_4(%arg0: i32, %arg1: i32) -> (i32, i32) {
    %c0_i32 = arith.constant 0 : i32
    return %arg0, %arg1 : i32, i32
  }
  func.func @transform_5(%arg0: i32, %arg1: i32) -> (i32, i32) {
    %c0_i32 = arith.constant 0 : i32
    return %arg0, %arg1 : i32, i32
  }
  func.func @transform_6(%arg0: i32, %arg1: i32) -> (i32, i32) {
    %c0_i32 = arith.constant 0 : i32
    return %arg0, %arg1 : i32, i32
  }
}

</mosaic_0001>

<bundles_post_ra>
// kernel: tpu_custom_call.1
= control target key start
LH: loop header
LB: loop body
LE: loop exit
PB: predicated region body
PF: predicated region fallthrough
CT: control target
= control target key end

     0   :  { %12 = vsyncpa [#allocation3], 0  ;;  %v39_v1 = vlaneseq  ;;  %s387_s0 = inlined_call_operand.vmem [shape: f32[8,32], index: 0, kind: input, shape index: {}]   ;;  %s388_s1 = inlined_call_operand.vmem [shape: f32[8,32], index: 1, kind: input, shape index: {}]   ;;  %s389_s2 = inlined_call_operand.vmem [shape: f32[3,32], index: 2, kind: input, shape index: {}]   ;;  %s390_s3 = inlined_call_operand.vmem [shape: bf16[32,16], index: 3, kind: input, shape index: {}]   ;;  %s391_s4 = inlined_call_operand.hbm [shape: f32[8,16], index: 4, kind: output, shape index: {0}]   ;;  %s392_s5 = inlined_call_operand.hbm [shape: f32[8,16], index: 5, kind: output, shape index: {1}]   ;;  %s393_s6 = inlined_call_operand.hbm [shape: f32[8,16], index: 6, kind: output, shape index: {2}]  }
   0x1   :  { %v208_v0 = vld [vmem:[%s390_s3] sm:$0xff]   ;;  %v209_v2 = vld [vmem:[%s390_s3 + $0x8] sm:$0xff]  }
   0x2   :  { %196 = vmatprep.subr.bf16.mxu0 %v208_v0  ;;  %v187_v3 = vld.sshfl [vmem:[%s389_s2] sm:$0x13 pattern:$0x75316420] }
   0x3   :  { %197 = vmatpush3.bf16.msra.mxu0 %v208_v0 }
   0x4   :  { %13 = vsyncpa [#allocation5], 0  ;;  %198 = vmatprep.subr.bf16.mxu0 %v209_v2  ;;  %v280_v4 = vmov 1966171168   ;;  %v40_v6 = vshrl.u32 %v39_v1, 7  ;;  %v35_v7 = vcombine.high %v187_v3, %v187_v3  ;;  %v23_v9 = vld [vmem:[%s387_s0] sm:$0xff] }
   0x5   :  { %v37_v5 = vunpack.c.l.s4 %v280_v4  ;;  %v24_v10 = vld [vmem:[%s388_s1] sm:$0xff]  ;;  %vm87_vm0 = vcmask 261120   ;;  %s281_s0 = smov [#allocation2]   ;;  %vm142_vm1 = vcmask 130048   ;;  %s282_s1 = smov [#allocation4]  }
   0x6   :  { %v53_v12 = vsub.s32 0, %v40_v6  ;;  %v25_v13 = vmul.f32 %v24_v10, %v23_v9  ;;  %s152_s2 = sshll.u32 %s281_s0, 4  ;;  %s162_s30 = sshll.u32 %s282_s1, 4  ;;  %s153_s2 = int_to_ptr.vmem [resolvable:$true] %s152_s2  ;;  %s336_s30 = int_to_ptr.vmem [resolvable:$true] %s162_s30 }
   0x7   :  { %v38_v8 = vunpack.c.0.s8 %v37_v5  ;;  %199 = vmatpush3.bf16.msra.mxu0 %v209_v2  ;;  %s283_s7 = smov [#allocation6]   ;;  %s210_s9 = scalar_lea.vmem %s153_s2, 128 }
   0x8   :  { %s172_s8 = sshll.u32 %s283_s7, 4  ;;  %p211_p0 = scmp.ne.s32.totalorder %s153_s2, %s210_s9  ;;  %s338_s8 = int_to_ptr.vmem [resolvable:$true] %s172_s8 }
   0x9   :  { %v41_v11 = vsub.s32 %v38_v8, %v40_v6  ;;  %p215_p1 = scmp.lt.s32.totalorder %s153_s2, %s153_s2  ;;  %p216_p2 = scmp.lt.s32.totalorder %s210_s9, %s210_s9 }
   0xb   :  { %v42_v14 = vrot.slane %v187_v3, %v41_v11  ;;  %v49_v15 = vrot.slane %v35_v7, %v41_v11  ;;  %p217_p3 = por %p216_p2, %p215_p1 }
   0xd   :  { %v50_v16 = vcombine.high %v42_v14, %v42_v14  ;;  %v54_v17 = vrot.slane %v42_v14, %v53_v12  ;;  %v58_v18 = vrot.slane %v49_v15, %v53_v12  ;;  %p218_p4 = pnand %p217_p3, %p211_p0 }
   0xf   :  { %v66_v19 = vmul.f32 %v54_v17, %v25_v13  ;;  %v67_v20 = vmul.f32 %v58_v18, %v25_v13  ;;  %v62_v21 = vrot.slane %v50_v16, %v53_v12 }
  0x11   :  { %v69_v22 = vpack.c.bf16 %v67_v20, %v66_v19  ;;  %v68_v23 = vmul.f32 %v62_v21, %v25_v13 }
  0x13   :  { %200 = vmatprep.mubr.msk.bf16.mxu0 %vm87_vm0, %v69_v22  ;;  %v70_v24 = vpack.c.bf16 %v68_v23, %v68_v23 }
  0x15   :  { %201 = vmatmul.mubr.msk.bf16.vlgmr.msra.gmra.mrb[0].mxu0 %vm87_vm0, %v70_v24 }
  0xe8   :  { %v202_v25 = vpop.f32.mrb[0].mxu0 }
  0xe9   :  { %145 = vst.msk [vmem:[#allocation6] sm:$0xff] %vm142_vm1, %v202_v25  ;;  %v128_v26 = vpop.f32.mrb[1].mxu0 }
  0xea   :  { %143 = vst.msk [vmem:[#allocation2] sm:$0xff] %vm142_vm1, %v128_v26  ;;  %v203_v27 = vpop.f32.mrb[2].mxu0 }
  0xeb   :  { %v131_v28 = vpop.f32.mrb[3].mxu0 }
  0xec   :  { %221 = shalt.err (!%p218_p4)
}
  0xed   :  { %s222_s12 = scalar_lea.hbm %s391_s4, 128 }
  0xee   :  { %p223_p5 = scmp.ne.s32.totalorder %s391_s4, %s222_s12  ;;  %p226_p6 = scmp.lt.u32.totalorder %s222_s12, %s391_s4 }
  0xf0   :  { %p228_p7 = pnand %p226_p6, %p223_p5 }
  0xf2   :  { %231 = shalt.err (!%p228_p7)
}
  0xf3   :  { %155 = dma.vmem_to_hbm [thread:$0]  %s153_s2, 128, %s391_s4, [#allocation3]   ;;  %144 = vst.msk [vmem:[#allocation4] sm:$0xff] %vm142_vm1, %v131_v28 }
  0xf4   :  { %s232_s19 = scalar_lea.vmem %s336_s30, 128  ;;  %p237_p9 = scmp.lt.s32.totalorder %s336_s30, %s336_s30 }
  0xf5   :  { %p233_p8 = scmp.ne.s32.totalorder %s336_s30, %s232_s19  ;;  %p238_p10 = scmp.lt.s32.totalorder %s232_s19, %s232_s19 }
  0xf7   :  { %p239_p11 = por %p238_p10, %p237_p9 }
  0xf9   :  { %p240_p12 = pnand %p239_p11, %p233_p8 }
  0xfb   :  { %243 = shalt.err (!%p240_p12)
}
  0xfc   :  { %s244_s22 = scalar_lea.hbm %s392_s5, 128 }
  0xfd   :  { %p245_p13 = scmp.ne.s32.totalorder %s392_s5, %s244_s22  ;;  %p248_p0 = scmp.lt.u32.totalorder %s244_s22, %s392_s5 }
  0xff   :  { %p250_p1 = pnand %p248_p0, %p245_p13 }
 0x101   :  { %253 = shalt.err (!%p250_p1)
}
 0x102   :  { %165 = dma.vmem_to_hbm [thread:$0]  %s336_s30, 128, %s392_s5, [#allocation5]  }
 0x103   :  { %s254_s28 = scalar_lea.vmem %s338_s8, 128  ;;  %p259_p3 = scmp.lt.s32.totalorder %s338_s8, %s338_s8 }
 0x104   :  { %p255_p2 = scmp.ne.s32.totalorder %s338_s8, %s254_s28  ;;  %p260_p4 = scmp.lt.s32.totalorder %s254_s28, %s254_s28 }
 0x106   :  { %p261_p5 = por %p260_p4, %p259_p3 }
 0x108   :  { %p262_p6 = pnand %p261_p5, %p255_p2 }
 0x10a   :  { %265 = shalt.err (!%p262_p6)
}
 0x10b   :  { %s266_s0 = scalar_lea.hbm %s393_s6, 128 }
 0x10c   :  { %p267_p7 = scmp.ne.s32.totalorder %s393_s6, %s266_s0  ;;  %p270_p8 = scmp.lt.u32.totalorder %s266_s0, %s393_s6 }
 0x10e   :  { %p272_p9 = pnand %p270_p8, %p267_p7 }
 0x110   :  { %275 = shalt.err (!%p272_p9)
}
 0x111   :  { %175 = dma.vmem_to_hbm [thread:$0]  %s338_s8, 128, %s393_s6, [#allocation5]  }
 0x112   :  { %276 = dma.done.wait [#allocation3], 128  }
 0x113   :  { %277 = vsyncadd [#allocation3], 4294967168 }
 0x114   :  { %278 = dma.done.wait [#allocation5], 256  }
 0x115   :  { %279 = vsyncadd [#allocation5], 4294967040 }
 0x116   :  { %185 = vsyncpa [#allocation3], 1 }
 0x117   :  { %186 = vsyncpa [#allocation5], 1 }

</bundles_post_ra>
